<compile_context>
chip_gen: v5e
topology: v5e:2x2
jax: 0.10.0
libtpu: 0.0.40
codegen_flags: <defaults>
</compile_context>

<pallas_src>
import math
import functools

import jax
import jax.numpy as jnp
from jax.experimental import pallas as pl
from jax.experimental.pallas import tpu as pltpu


_LANE = 128
# Total budget for our own VMEM buffers (activation stream + accumulator +
# target stream + output stream).  Kept below the explicit 32 MiB
# vmem_limit_bytes so the plan fits the scoped VMEM of every generation
# (v5e 128 MiB physical / 16 MiB default scoped, v6e 128/32, v7x 64/32).
_VMEM_BUDGET_BYTES = 26 * 1024 * 1024
_VMEM_LIMIT_BYTES = 32 * 1024 * 1024


# ------------------------------ tiling helpers ------------------------------ #

def _round_up(x, m):
    return ((x + m - 1) // m) * m


def _cdiv(a, b):
    return (a + b - 1) // b


def _pick_bblk(b, c):
    """Batch elements per grid step.

    Pack several batch elements when C is small so the MXU tile isn't mostly
    empty, but keep grid[0] = B // Bblk >= 2 whenever B >= 2 so both v7x
    TensorCores get work ("parallel" semantics shard this axis across cores).
    """
    if c > 64 or b <= 1:
        return 1
    cap = min(b // 2, 8)
    for bb in range(cap, 0, -1):
        if b % bb == 0:
            return bb
    return 1


def _pick_tk(n, c, bblk, x_itemsize, fixed_bytes, nbuf):
    """N-tile size: lane-aligned, as large as the remaining VMEM budget allows."""
    n_aligned = _round_up(n, _LANE)
    avail = _VMEM_BUDGET_BYTES - fixed_bytes
    per_lane = max(1, nbuf * bblk * c * x_itemsize)
    tk = max(_LANE, (avail // per_lane) // _LANE * _LANE)
    return min(tk, n_aligned)


def _plan(b, c, n, x_itemsize, fixed_bytes_fn):
    """Pick (bblk, tk, kt, nbuf, vmem_limit) for one pallas_call."""
    bblk = _pick_bblk(b, c)
    fixed = fixed_bytes_fn(bblk)
    nbuf = 2
    tk = _pick_tk(n, c, bblk, x_itemsize, fixed, nbuf)
    kt = _cdiv(n, tk)
    if c <= 64 and kt >= 4:
        # Small-C tiles have very little compute per DMA; a third activation
        # buffer hides the exposed DMA latency (re-budgeted below).
        nbuf = 3
        tk = _pick_tk(n, c, bblk, x_itemsize, fixed, nbuf)
        kt = _cdiv(n, tk)
    used = fixed + nbuf * bblk * c * tk * x_itemsize
    vmem_limit = max(_VMEM_LIMIT_BYTES, _round_up(used + (2 << 20), 1 << 20))
    return bblk, tk, kt, nbuf, vmem_limit


def _x_block_spec(bblk, c, tk, nbuf):
    idx = lambda i, k: (i, 0, k)
    if nbuf > 2 and hasattr(pl, "Buffered"):
        try:
            return pl.BlockSpec((bblk, c, tk), idx,
                                pipeline_mode=pl.Buffered(nbuf))
        except TypeError:
            pass  # older jax without pipeline_mode — fall back to 2-deep
    return pl.BlockSpec((bblk, c, tk), idx)


# ------------------------------ kernel helpers ------------------------------ #

def _masked_tile(x_ref, n, tk):
    """Load the current (Bblk, C, TK) tile, zeroing lanes past N.

    N is NOT padded in HBM; the last tile can overhang the array and Pallas
    does not zero-fill the out-of-bounds lanes, so they must be masked before
    feeding the MXU.  The mask is statically elided when TK divides N.
    """
    x = x_ref[...]
    if n % tk != 0:
        k = pl.program_id(1)
        lane = jax.lax.broadcasted_iota(jnp.int32, x.shape, dimension=2)
        x = jnp.where(lane < (n - k * tk), x, jnp.zeros_like(x))
    return x


def _gram_epilogue(g, off, pwr, inv_denom):
    # (G + off) ** pwr / comb(N, pwr) — same op order as the PyTorch reference.
    # NOTE: pow-before-normalize can lose f32 precision for very large N and
    # pwr > 1 (shared numerical hazard with the reference, not a porting bug).
    if off != 0.0:
        g = g + off
    if pwr != 1:
        g = g ** pwr
    return g * inv_denom


# ------------------------------ Pallas kernels ------------------------------ #

def _gram_kernel(x_ref, g_ref, *, off, pwr, inv_denom, n, tk, mxu_dtype):
    # x_ref: (Bblk, C, TK), g_ref: (Bblk, C, C) f32 — resident across the k axis.
    k = pl.program_id(1)

    @pl.when(k == 0)
    def _():
        g_ref[...] = jnp.zeros_like(g_ref)

    x = _masked_tile(x_ref, n, tk)
    if mxu_dtype is not None:
        x = x.astype(mxu_dtype)
    # Contraction over the last (lane) axis of both operands: no in-kernel
    # transpose; accumulate in f32 directly into the resident output block.
    g_ref[...] += jnp.einsum("bcn,bdn->bcd", x, x,
                             preferred_element_type=jnp.float32)

    @pl.when(k == pl.num_programs(1) - 1)
    def _():
        g_ref[...] = _gram_epilogue(g_ref[...], off, pwr, inv_denom)


def _loss_kernel(x_ref, t_ref, out_ref, acc_ref, *, off, pwr, inv_denom,
                 loss_weight, n, tk, mxu_dtype):
    # x_ref: (Bblk, C, TK), t_ref: (Bblk or 1, C, C), out_ref: (Bblk, 1, 1)
    k = pl.program_id(1)

    @pl.when(k == 0)
    def _():
        acc_ref[...] = jnp.zeros_like(acc_ref)

    x = _masked_tile(x_ref, n, tk)
    if mxu_dtype is not None:
        x = x.astype(mxu_dtype)
    acc_ref[...] += jnp.einsum("bcn,bdn->bcd", x, x,
                               preferred_element_type=jnp.float32)

    @pl.when(k == pl.num_programs(1) - 1)
    def _():
        g = _gram_epilogue(acc_ref[...], off, pwr, inv_denom)
        t = t_ref[...].astype(jnp.float32)          # broadcasts if batch-1 target
        diff = g - t
        # mean over the full (C, C) Gram -> matches torch.mean(loss, (1, 2))
        loss = loss_weight * jnp.mean(diff * diff, axis=(1, 2), keepdims=True)
        out_ref[...] = loss.astype(out_ref.dtype)


# ------------------------------- JAX wrappers ------------------------------- #

@functools.partial(jax.jit, static_argnames=("off", "pwr", "mxu_dtype"))
def _kernel_matrix_batch_impl(inp_nchw, *, off, pwr, mxu_dtype):
    b, c, h, w = inp_nchw.shape
    n = h * w
    x = inp_nchw.reshape(b, c, n)   # no HBM pad: ragged tail masked in kernel

    def fixed_bytes(bblk):
        return 2 * bblk * c * c * 4  # double-buffered f32 output stream

    # TODO(synk): for C >= 1024 on v7x (64 MiB VMEM), tile the (C, C) Gram into
    # (Cm, Cn) output blocks via two extra grid axes instead of holding it whole.
    bblk, tk, kt, nbuf, vmem_limit = _plan(b, c, n, x.dtype.itemsize, fixed_bytes)
    inv_denom = 1.0 / float(math.comb(n, int(pwr)))
    kern = functools.partial(
        _gram_kernel, off=float(off), pwr=int(pwr), inv_denom=inv_denom,
        n=n, tk=tk,
        mxu_dtype=None if mxu_dtype is None else jnp.dtype(mxu_dtype))
    return pl.pallas_call(
        kern,
        out_shape=jax.ShapeDtypeStruct((b, c, c), jnp.float32),
        grid=(b // bblk, kt),
        in_specs=[_x_block_spec(bblk, c, tk, nbuf)],
        out_specs=pl.BlockSpec((bblk, c, c), lambda i, k: (i, 0, 0)),
        compiler_params=pltpu.CompilerParams(
            dimension_semantics=("parallel", "arbitrary"),
            vmem_limit_bytes=vmem_limit),
    )(x)


def kernel_matrix_batch(inp_nchw, off=0.0, pwr=1, mxu_dtype=None):
    """Pallas equivalent of the PyTorch kernel_matrix_batch (NCHW -> (B, C, C))."""
    return _kernel_matrix_batch_impl(inp_nchw, off=float(off), pwr=int(pwr),
                                     mxu_dtype=mxu_dtype)


@functools.partial(jax.jit,
                   static_argnames=("off", "pwr", "loss_weight", "mxu_dtype"))
def _kernel_loss_impl(inp_nchw, target, *, off, pwr, loss_weight, mxu_dtype):
    b, c, h, w = inp_nchw.shape
    n = h * w
    bt = target.shape[0]
    x = inp_nchw.reshape(b, c, n)

    def fixed_bytes(bblk):
        acc = bblk * c * c * 4                                  # f32 accumulator
        tgt = 2 * (bblk if bt == b else 1) * c * c * target.dtype.itemsize
        out = 2 * bblk * 4                                      # scalar outputs
        return acc + tgt + out

    bblk, tk, kt, nbuf, vmem_limit = _plan(b, c, n, x.dtype.itemsize, fixed_bytes)
    inv_denom = 1.0 / float(math.comb(n, int(pwr)))

    if bt == b:
        # per-batch target tiles, constant across the N reduction axis
        t_spec = pl.BlockSpec((bblk, c, c), lambda i, k: (i, 0, 0))
    else:
        # batch-1 target: single resident copy (expand_as semantics without
        # materializing B identical copies in HBM)
        t_spec = pl.BlockSpec((1, c, c), lambda i, k: (0, 0, 0))

    kern = functools.partial(
        _loss_kernel, off=float(off), pwr=int(pwr), inv_denom=inv_denom,
        loss_weight=float(loss_weight), n=n, tk=tk,
        mxu_dtype=None if mxu_dtype is None else jnp.dtype(mxu_dtype))
    loss = pl.pallas_call(
        kern,
        out_shape=jax.ShapeDtypeStruct((b, 1, 1), jnp.float32),
        grid=(b // bblk, kt),
        in_specs=[_x_block_spec(bblk, c, tk, nbuf), t_spec],
        out_specs=pl.BlockSpec((bblk, 1, 1), lambda i, k: (i, 0, 0)),
        scratch_shapes=[pltpu.VMEM((bblk, c, c), jnp.float32)],
        compiler_params=pltpu.CompilerParams(
            dimension_semantics=("parallel", "arbitrary"),
            vmem_limit_bytes=vmem_limit),
    )(x, target)
    return loss.reshape(b)


class KernelLossBatchImg:
    """JAX/Pallas port of the PyTorch KernelLossBatchImg module.

    __call__(inp) returns inp unchanged and stores the per-batch loss in
    self.loss, exactly like the torch module's forward.
    """

    def __init__(self, target_feature, loss_weight=1, off=0, pwr=1,
                 mxu_dtype=None):
        self.loss_weight = float(loss_weight)
        self.off = float(off)
        self.pwr = int(pwr)
        # Opt-in bf16 MXU operands (f32 accumulation) for v6e/v7x throughput;
        # None keeps native-dtype operands for strict f32 parity.
        self.mxu_dtype = mxu_dtype
        # Precomputed (detached) target Gram matrices, shape (B_t, C, C).
        self.target = kernel_matrix_batch(target_feature, self.off, self.pwr,
                                          mxu_dtype=mxu_dtype)
        self.loss = None

    def __call__(self, inp):
        b = inp.shape[0]
        bt = self.target.shape[0]
        if bt not in (1, b):
            raise ValueError(
                f"target batch {bt} is not expandable to input batch {b}")
        self.loss = _kernel_loss_impl(
            inp, self.target, off=self.off, pwr=self.pwr,
            loss_weight=self.loss_weight, mxu_dtype=self.mxu_dtype)
        return inp


# --------------------------------- reference -------------------------------- #

def _reference_gram(f, off=0.0, pwr=1):
    a, bb, c, d = f.shape
    n = c * d
    x = f.reshape(a, bb, n).astype(jnp.float32)
    g = jnp.einsum("bij,bkj->bik", x, x, precision=jax.lax.Precision.HIGHEST)
    return (g + off) ** pwr / float(math.comb(n, pwr))


def _reference_loss(inp, target_feature, loss_weight=1.0, off=0.0, pwr=1):
    G = _reference_gram(inp, off, pwr)
    T = jnp.broadcast_to(_reference_gram(target_feature, off, pwr), G.shape)
    return loss_weight * jnp.mean((G - T) ** 2, axis=(1, 2))


# ------------------------------------ main ----------------------------------- #

if __name__ == "__main__":
    key = jax.random.PRNGKey(0)
    k_tgt, k_inp = jax.random.split(key)

    B, C, H, W = 2, 4, 16, 16
    target_feature = jax.random.normal(k_tgt, (B, C, H, W), dtype=jnp.float32)
    x = jax.random.normal(k_inp, (B, C, H, W), dtype=jnp.float32)

    module = KernelLossBatchImg(target_feature, loss_weight=1.0, off=0.0, pwr=1)
    out = module(x)
    jax.block_until_ready(out)
    jax.block_until_ready(module.loss)

    # Sanity checks against a pure-JAX reference.
    g_kernel = kernel_matrix_batch(x, 0.0, 1)
    jax.block_until_ready(g_kernel)
    g_ref = _reference_gram(x, 0.0, 1)
    loss_ref = _reference_loss(x, target_feature, 1.0, 0.0, 1)

    assert out.shape == x.shape
    assert bool(jnp.allclose(out, x))
    assert bool(jnp.allclose(g_kernel, g_ref, rtol=1e-4, atol=1e-5)), (
        g_kernel, g_ref)
    assert bool(jnp.allclose(module.loss, loss_ref, rtol=1e-4, atol=1e-5)), (
        module.loss, loss_ref)

    print("KERNEL_OK")
</pallas_src>

<mosaic_0001>
module attributes {stable_mosaic.version = 11 : i64} {
  func.func @_gram_kernel(%arg0: i32, %arg1: i32, %arg2: memref<1x4x256xf32, #tpu.memory_space<vmem>>, %arg3: memref<1x4x4xf32, #tpu.memory_space<vmem>>) attributes {dimension_semantics = [#tpu.dimension_semantics<parallel>, #tpu.dimension_semantics<arbitrary>], iteration_bounds = array<i64: 2, 1>, scalar_prefetch = 0 : i64, scratch_operands = 0 : i64, tpu.core_type = #tpu.core_type<tc>, window_params = [{transform_indices = @transform_0, window_bounds = array<i64: 1, 4, 256>}, {transform_indices = @transform_1, window_bounds = array<i64: 1, 4, 4>}]} {
    %c0_i32 = arith.constant 0 : i32
    %0 = arith.cmpi eq, %arg1, %c0_i32 : i32
    %1 = arith.extui %0 : i1 to i32
    %c0_i32_0 = arith.constant 0 : i32
    %2 = arith.cmpi ne, %1, %c0_i32_0 : i32
    scf.if %2 {
      %cst_11 = arith.constant 0.000000e+00 : f32
      %11 = vector.broadcast %cst_11 : f32 to vector<1x4x4xf32>
      %c0_12 = arith.constant 0 : index
      %c0_13 = arith.constant 0 : index
      %c0_14 = arith.constant 0 : index
      %12 = vector.load %arg3[%c0_12, %c0_13, %c0_14] : memref<1x4x4xf32, #tpu.memory_space<vmem>>, vector<1x4x4xf32>
      tpu.vector_store %arg3[%c0_12, %c0_13, %c0_14], %11 {strides = array<i32>} : memref<1x4x4xf32, #tpu.memory_space<vmem>>, vector<1x4x4xf32>,
    } else {
    }
    %c0 = arith.constant 0 : index
    %c0_1 = arith.constant 0 : index
    %c0_2 = arith.constant 0 : index
    %3 = vector.load %arg2[%c0, %c0_1, %c0_2] : memref<1x4x256xf32, #tpu.memory_space<vmem>>, vector<1x4x256xf32>
    %c0_3 = arith.constant 0 : index
    %c0_4 = arith.constant 0 : index
    %c0_5 = arith.constant 0 : index
    %4 = vector.load %arg3[%c0_3, %c0_4, %c0_5] : memref<1x4x4xf32, #tpu.memory_space<vmem>>, vector<1x4x4xf32>
    "tpu.trace_start"() <{level = 10 : i32, message = "bcn,bdn->bcd"}> : () -> ()
    %cst = arith.constant dense<0.000000e+00> : vector<1x4x4xf32>
    %5 = tpu.matmul %3, %3, %cst {dimension_numbers = #tpu.dot_dimension_numbers<[2], [2], [1], [1], [0, 0, 0, 1, 1, 1], [0], [0]>} : vector<1x4x256xf32>, vector<1x4x256xf32>, vector<1x4x4xf32> -> vector<1x4x4xf32>
    "tpu.trace_stop"() : () -> ()
    %6 = arith.addf %4, %5 : vector<1x4x4xf32>
    %c0_6 = arith.constant 0 : index
    %c0_7 = arith.constant 0 : index
    %c0_8 = arith.constant 0 : index
    %7 = vector.load %arg3[%c0_6, %c0_7, %c0_8] : memref<1x4x4xf32, #tpu.memory_space<vmem>>, vector<1x4x4xf32>
    tpu.vector_store %arg3[%c0_6, %c0_7, %c0_8], %6 {strides = array<i32>} : memref<1x4x4xf32, #tpu.memory_space<vmem>>, vector<1x4x4xf32>,
    %c0_i32_9 = arith.constant 0 : i32
    %8 = arith.cmpi eq, %arg1, %c0_i32_9 : i32
    %9 = arith.extui %8 : i1 to i32
    %c0_i32_10 = arith.constant 0 : i32
    %10 = arith.cmpi ne, %9, %c0_i32_10 : i32
    scf.if %10 {
      %c0_11 = arith.constant 0 : index
      %c0_12 = arith.constant 0 : index
      %c0_13 = arith.constant 0 : index
      %11 = vector.load %arg3[%c0_11, %c0_12, %c0_13] : memref<1x4x4xf32, #tpu.memory_space<vmem>>, vector<1x4x4xf32>
      %cst_14 = arith.constant 3.906250e-03 : f32
      %12 = vector.broadcast %cst_14 : f32 to vector<1x4x4xf32>
      %13 = arith.mulf %11, %12 : vector<1x4x4xf32>
      %c0_15 = arith.constant 0 : index
      %c0_16 = arith.constant 0 : index
      %c0_17 = arith.constant 0 : index
      %14 = vector.load %arg3[%c0_15, %c0_16, %c0_17] : memref<1x4x4xf32, #tpu.memory_space<vmem>>, vector<1x4x4xf32>
      tpu.vector_store %arg3[%c0_15, %c0_16, %c0_17], %13 {strides = array<i32>} : memref<1x4x4xf32, #tpu.memory_space<vmem>>, vector<1x4x4xf32>,
    } else {
    }
    return
  }
  func.func @transform_0(%arg0: i32, %arg1: i32) -> (i32, i32, i32) {
    %c0_i32 = arith.constant 0 : i32
    %c0_i32_0 = arith.constant 0 : i32
    return %arg0, %c0_i32, %arg1 : i32, i32, i32
  }
  func.func @transform_1(%arg0: i32, %arg1: i32) -> (i32, i32, i32) {
    %c0_i32 = arith.constant 0 : i32
    %c0_i32_0 = arith.constant 0 : i32
    %c0_i32_1 = arith.constant 0 : i32
    return %arg0, %c0_i32, %c0_i32_0 : i32, i32, i32
  }
}

</mosaic_0001>

<bundles_post_ra>
// kernel: _kernel_matrix_batch_impl.1
= control target key start
LH: loop header
LB: loop body
LE: loop exit
PB: predicated region body
PF: predicated region fallthrough
CT: control target
= control target key end

     0   :  { %6 = vsyncpa [#allocation3], 0  ;;  %s560_s0 = inlined_call_operand.vmem [shape: f32[2,4,256], index: 0, kind: input, shape index: {}]   ;;  %s561_s1 = inlined_call_operand.hbm [shape: f32[2,4,4], index: 1, kind: output, shape index: {}]  }
   0x1   :  { %8 = vsyncpa [#allocation3 + $0x1], 0  ;;  %s460_s6 = smov 0   ;;  %s462_s7 = smov 0  }
   0x2   :  { %s464_s8 = smov 0   ;;  %s466_s9 = smov 0  }
   0x3   :  { %s468_s10 = smov 0   ;;  %s470_s11 = smov 0  }
   0x4 LB: > { %s300_s12 = sadd.s32 4294967295, %s447_s11   ;;  %s301_s13 = sadd.s32 4294967294, %s447_s11   ;;  %s447_s11 = sphi %s470_s11, %s14_s11   ;;  %s443_s10 = sphi %s468_s10, %s568_s10   ;;  %s439_s9 = sphi %s466_s9, %s567_s9   ;;  %s435_s8 = sphi %s464_s8, %s566_s8   ;;  %s431_s7 = sphi %s462_s7, %s565_s7   ;;  %s427_s6 = sphi %s460_s6, %s564_s6  }
   0x5   : > { %s26_s14 = sadd.s32 1, %s443_s10  ;;  %s61_s15 = sadd.s32 1, %s435_s8 }
   0x6   : > { %p28_p0 = scmp.ge.s32.totalorder %s26_s14, 2  ;;  %p71_p1 = scmp.ne.s32.totalorder %s435_s8, %s431_s7 }
   0x7   : > { %p72_p2 = scmp.eq.s32.totalorder %s300_s12, 1  ;;  %p77_p3 = scmp.ne.s32.totalorder %s431_s7, %s427_s6 }
   0x8   : > { %s570_s14 = smov (%p28_p0, %s26_s14), 0  ;;  %p78_p5 = scmp.eq.s32.totalorder %s301_s13, 1 }
   0x9   : > { %p500_p4 = por %p72_p2, %p71_p1  ;;  %s58_s17 = ssub.s32 %s443_s10, %s570_s14 }
   0xa   : > { %p304_p6 = scmp.ge.s32.totalorder %s447_s11, 1  ;;  %p59_p7 = scmp.eq.s32.totalorder %s58_s17, 0 }
   0xb   : > { %p507_p8 = por %p78_p5, %p77_p3  ;;  %p109_p9 = scmp.lt.s32.totalorder %s447_s11, 3 }
   0xc   : > { %s513_s19 = scalar_select %p59_p7, %s435_s8, %s61_s15  }
   0xd   : > { %p110_p10 = pnand %p304_p6, %p109_p9 }
   0xe   : > { %p134_p11 = scmp.lt.s32.totalorder (!%p110_p10), %s439_s9, 1  ;;  %s130_s25 = sand.u32 (!%p110_p10), 1, %s431_s7  }
   0xf   : > { %113 = sbr.rel (%p110_p10) target bundleno = 187 (0xbb), region = 24  ;;  %s305_s26 = sshll.u32 (!%p110_p10), %s130_s25, 2 }
  0x10   : > { %s132_s27 = scalar_lea.vmem (!%p110_p10), [#allocation2], %s305_s26  ;;  %s309_s28 = sshll.u32 (!%p110_p10), %s439_s9, 2 }
  0x11   : > { %s222_s2 = scalar_lea.hbm (!%p110_p10), %s561_s1, %s309_s28  ;;  %s224_s3 = sshll.u32 (!%p110_p10), %s132_s27, 4  ;;  %s225_s3 = int_to_ptr.vmem [resolvable:$true] %s224_s3 }
  0x12   : > { %s226_s4 = sshll.u32 (!%p110_p10), %s222_s2, 4  ;;  %s212_s5 = scalar_lea.sflag (!%p110_p10), [#allocation3], %s130_s25  ;;  %s227_s4 = int_to_ptr.hbm [resolvable:$true] %s226_s4 }
  0x13   : > { %s383_s12 = sshra.s32 (!%p110_p10), %s227_s4, 4  ;;  %s389_s17 = scalar_lea.hbm (!%p110_p10), %s561_s1, 8  ;;  %s384_s12 = int_to_ptr.hbm [resolvable:$true] %s383_s12 }
  0x14   : > { %s135_s20 = scalar_select %p134_p11, %s439_s9, 1  ;;  %vm147_vm0 = vcmask 27648   ;;  %v449_v5 = vmov 0.0  }
  0x15   : > { %148 = vst.msk [vmem:[%s132_s27] sm:$0xf] %vm147_vm0, %v449_v5  ;;  %s385_s13 = scalar_lea.hbm %s384_s12, 4  ;;  %p390_p1 = scmp.lt.s32.totalorder %s384_s12, %s561_s1 }
  0x16   : > { %s312_s21 = sshll.u32 %s135_s20, 3  ;;  %p386_p12 = scmp.ne.s32.totalorder %s384_s12, %s385_s13 }
  0x17   : > { %s141_s24 = scalar_lea.vmem %s560_s0, %s312_s21  ;;  %p391_p2 = scmp.lt.s32.totalorder %s389_s17, %s385_s13 }
  0x18   : > { %v149_v0 = vld [vmem:[%s141_s24] sm:$0xff]  ;;  %p387_p13 = pnand %p386_p12, %p500_p4 }
  0x19   : > { %152 = vst [vmem:[#allocation1] ss:$2 sm:$0xff] %v149_v0  ;;  %p392_p3 = por %p391_p2, %p390_p1 }
  0x1a   : > { %p388_p0 = pneg %p387_p13 }
  0x1c   : > { %v150_v7 = vld [vmem:[%s132_s27] sm:$0xf]  ;;  %p393_p5 = pnand %p392_p3, %p388_p0 }
  0x20   : > { %v153_v1 = vld.sshfl [vmem:[#allocation1] sm:$0xff pattern:$0x75316420]  ;;  %v154_v2 = vld.sshfl [vmem:[#allocation1 + $0x8] sm:$0xff pattern:$0x75316420] }
  0x21   : > { %157 = vst [vmem:[#allocation1] ss:$2 sm:$0xff] %v149_v0 }
  0x28   : > { %v158_v3 = vld.sshfl [vmem:[#allocation1] sm:$0xff pattern:$0x75316420]  ;;  %v159_v4 = vld.sshfl [vmem:[#allocation1 + $0x8] sm:$0xff pattern:$0x75316420] }
  0x29   : > { %177 = vmatpush.xpose.msra.mxu0 %v158_v3  ;;  %197 = vmatpush.xpose.msra.mxu1 %v159_v4 }
  0x2c   : > { %178 = vmatmul.f32.vlgmr.msra.gmra.mxu0 %v153_v1  ;;  %198 = vmatmul.f32.vlgmr.msra.gmra.mxu1 %v154_v2 }
  0xa9   : > { %v179_v6 = vpop.f32.mrf.mxu0  ;;  %v199_v8 = vpop.f32.mrf.mxu1 }
  0xaa   : > { %v200_v9 = vadd.f32 %v199_v8, %v179_v6 }
  0xac   : > { %v202_v10 = vadd.f32 %v200_v9, %v150_v7 }
  0xae   : > { %204 = vst.msk [vmem:[%s132_s27] sm:$0xf] %vm147_vm0, %v202_v10 }
  0xb5   : > { %v208_v11 = vld [vmem:[%s132_s27] sm:$0xf] }
  0xb6   : > { %v209_v12 = vmul.f32 0.00390625, %v208_v11 }
  0xb8   : > { %210 = vst.msk [vmem:[%s132_s27] sm:$0xf] %vm147_vm0, %v209_v12 }
  0xb9   : > { %396 = shalt.err (!%p393_p5)
}
  0xba   : > { %313 = dma.vmem_to_hbm [thread:$0]  (%p500_p4), %s225_s3, 64, %s227_s4, %s212_s5  }
  0xbb PF: > { %p319_p6 = scmp.ge.s32.totalorder %s447_s11, 2  ;;  %s238_s22 = sand.u32 1, %s427_s6  }
  0xbc   : > { %s239_s23 = scalar_lea.sflag [#allocation3], %s238_s22 }
  0xbd   : > { %p316_p7 = pnand %p319_p6, %p507_p8 }
  0xbf   : > { %p317_p9 = pneg %p316_p7 }
  0xc1   : > { %422 = dma.done.wait (%p317_p9), %s239_s23, 64  }
  0xc2   : > { %424 = vsyncadd (%p317_p9), %s239_s23, 4294967232  ;;  %s14_s11 = sadd.s32 1, %s447_s11   ;;  %s564_s6 = smov %s431_s7 }
  0xc3   : > { %p11_p10 = scmp.ge.s32.totalorder %s14_s11, 4   ;;  %s565_s7 = smov %s435_s8 }
  0xc4   : > { %s566_s8 = smov %s513_s19  ;;  %s567_s9 = smov %s443_s10 }
  0xc5   : > { %s568_s10 = smov %s570_s14  ;;  %13 = sbr.rel (!%p11_p10) target bundleno = 4 (0x4), region = 67 }
  0xca   :  { %245 = vsyncpa [#allocation3], 1 }
  0xcb   :  { %247 = vsyncpa [#allocation3 + $0x1], 1 }

</bundles_post_ra>
